<compile_context>
chip_gen: v6e
topology: v6e:2x2x1
jax: 0.10.0
libtpu: 0.0.40
codegen_flags: <defaults>
</compile_context>

<pallas_src>
import math
from functools import partial

import jax
import jax.numpy as jnp
from jax.experimental import pallas as pl
from jax.experimental.pallas import tpu as pltpu

_VMEM_LIMIT = 32 * 1024 * 1024          # explicit scoped-VMEM request, safe on v5e/v6e/v7x
_ATTN_BLOCK_BUDGET = 2 * 1024 * 1024    # per-grid-step activation budget for attention


# ----------------------------------------------------------------------------- tiling helpers

def _row_tiling(R, target=256):
    """(row_block, padded_rows). Pads instead of falling back to one giant block,
    so LN/MLP stay pipelined and VMEM-bounded for any row count / any chip."""
    if R <= target:
        BR = max(8, -(-R // 8) * 8)
        return BR, BR
    for cand in (target, target // 2, target // 4):
        if R % cand == 0:
            return cand, R
    return target, -(-R // target) * target


def _choose_window_block(M, per_window_bytes, budget_bytes=_ATTN_BLOCK_BUDGET):
    """Largest divisor of M whose per-step footprint fits the budget, keeping >=2
    grid steps when M>=2 (pipelining; lets v7x shard the window axis across TCs)."""
    best = 1
    for d in range(1, M + 1):
        if M % d == 0 and d * per_window_bytes <= budget_bytes and (M // d >= 2 or M == 1):
            best = d
    return best


# ----------------------------------------------------------------------------- LayerNorm (norm1)

def _ln_kernel(x_ref, g_ref, b_ref, o_ref, *, eps):
    x = x_ref[...].astype(jnp.float32)                      # f32 VPU math (v5e-safe)
    mu = jnp.mean(x, axis=-1, keepdims=True)
    var = jnp.mean((x - mu) ** 2, axis=-1, keepdims=True)
    y = (x - mu) * jax.lax.rsqrt(var + eps)
    o_ref[...] = (y * g_ref[...] + b_ref[...]).astype(o_ref.dtype)


def layernorm_pallas(x2d, gamma, beta, eps=1e-5):
    R, C = x2d.shape
    BR, Rp = _row_tiling(R)
    xp = jnp.pad(x2d, ((0, Rp - R), (0, 0))) if Rp != R else x2d
    g = gamma.reshape(1, C).astype(jnp.float32)
    b = beta.reshape(1, C).astype(jnp.float32)
    out = pl.pallas_call(
        partial(_ln_kernel, eps=eps),
        out_shape=jax.ShapeDtypeStruct((Rp, C), x2d.dtype),
        grid=(Rp // BR,),
        in_specs=[pl.BlockSpec((BR, C), lambda i: (i, 0)),
                  pl.BlockSpec((1, C), lambda i: (0, 0)),
                  pl.BlockSpec((1, C), lambda i: (0, 0))],
        out_specs=pl.BlockSpec((BR, C), lambda i: (i, 0)),
        compiler_params=pltpu.CompilerParams(dimension_semantics=("parallel",),
                                             vmem_limit_bytes=_VMEM_LIMIT),
    )(xp, g, b)
    return out[:R] if Rp != R else out


# ----------------------------------------------------------------------------- fused attention
# conditional norm2 + fused QKV + masked multi-head attention + output proj,
# tiled over blocks of BM windows (grid axis "parallel").

def _attn_kernel(xt_ref, asy_ref, kp_ref, g2_ref, b2_ref,
                 wqkv_ref, bqkv_ref, wp_ref, bp_ref, o_ref, oh_ref,
                 *, BM, T, H, Dh, eps):
    C = H * Dh
    x = xt_ref[...].astype(jnp.float32)                     # (BM, T, C)

    # norm2 applied only to "asy" rows (exact in-place mutation semantics of the module)
    mu = jnp.mean(x, axis=-1, keepdims=True)
    var = jnp.mean((x - mu) ** 2, axis=-1, keepdims=True)
    xn = (x - mu) * jax.lax.rsqrt(var + eps) * g2_ref[...] + b2_ref[...]
    x2 = jnp.where(asy_ref[...] > 0.5, xn, x)               # (BM, T, C)

    # fused QKV: one bf16 MXU matmul, f32 accumulation. Scale pre-folded into Wq/bq.
    qkv = jnp.dot(x2.reshape(BM * T, C).astype(jnp.bfloat16), wqkv_ref[...],
                  preferred_element_type=jnp.float32) + bqkv_ref[...]     # (BM*T, 3C)
    qkv = qkv.reshape(BM, T, 3 * C)

    # key-padding mask (per window, per key), hoisted out of the head loop.
    neg_mask = kp_ref[...] > 0.5                            # (BM, 1, T)

    # Static head loop of single-batch (window) einsums; each head's PV output is
    # written head-major into the VMEM scratch so ONE K=C projection matmul follows.
    for h in range(H):
        qh = qkv[:, :, h * Dh:(h + 1) * Dh]
        kh = qkv[:, :, C + h * Dh:C + (h + 1) * Dh]
        vh = qkv[:, :, 2 * C + h * Dh:2 * C + (h + 1) * Dh]
        s = jnp.einsum('mqd,mkd->mqk', qh.astype(jnp.bfloat16), kh.astype(jnp.bfloat16),
                       preferred_element_type=jnp.float32)  # (BM, T, T)
        # exact semantics of attn_map[padding_index] = -10000.0 (mask key columns)
        s = jnp.where(neg_mask, jnp.float32(-10000.0), s)
        s = s - jnp.max(s, axis=-1, keepdims=True)          # f32 softmax math
        p = jnp.exp(s)
        p = p * pl.reciprocal(jnp.sum(p, axis=-1, keepdims=True), approx=True)
        pv = jnp.einsum('mqk,mkd->mqd', p.astype(jnp.bfloat16), vh.astype(jnp.bfloat16),
                        preferred_element_type=jnp.float32)  # (BM, T, Dh)
        oh_ref[:, h * Dh:(h + 1) * Dh] = pv.reshape(BM * T, Dh)

    out = jnp.dot(oh_ref[...].astype(jnp.bfloat16), wp_ref[...],
                  preferred_element_type=jnp.float32) + bp_ref[...]       # (BM*T, C)
    o_ref[...] = out.reshape(BM, T, C).astype(o_ref.dtype)


def wsa_attention_pallas(x_tok, is_asy, key_pad, g2, b2, Wqkv, bqkv, Wp, bp,
                         *, M, T, H, Dh, BM, eps=1e-5):
    C = H * Dh
    kernel = partial(_attn_kernel, BM=BM, T=T, H=H, Dh=Dh, eps=eps)
    win_spec = lambda shape: pl.BlockSpec(shape, lambda i: (i, 0, 0))
    cst_spec = lambda shape: pl.BlockSpec(shape, lambda i: (0, 0))
    # TODO(synk): constant-index weight blocks (Wqkv/Wp/biases) could be single-buffered
    # with pipeline_mode=pl.Buffered(1) to halve their VMEM reservation at large C.
    return pl.pallas_call(
        kernel,
        out_shape=jax.ShapeDtypeStruct((M, T, C), x_tok.dtype),
        grid=(M // BM,),
        in_specs=[win_spec((BM, T, C)),
                  win_spec((BM, T, 1)),
                  win_spec((BM, 1, T)),
                  cst_spec((1, C)), cst_spec((1, C)),
                  cst_spec((C, 3 * C)), cst_spec((1, 3 * C)),
                  cst_spec((C, C)), cst_spec((1, C))],
        out_specs=win_spec((BM, T, C)),
        scratch_shapes=[pltpu.VMEM((BM * T, C), jnp.float32)],   # head-major PV buffer
        compiler_params=pltpu.CompilerParams(dimension_semantics=("parallel",),
                                             vmem_limit_bytes=_VMEM_LIMIT),
    )(x_tok, is_asy, key_pad, g2, b2, Wqkv, bqkv, Wp, bp)


# ----------------------------------------------------------------------------- fused residual + MLP
# shortcut = norm2(XX[asy]);  xa = shortcut + ls1 * y;  xm = MLP(xa)   (drop1 == Identity)
# If ls2 is supplied (enable_CB == False), also fuse:  xo = xa + ls2 * xm  (single output).

_GELU_K = math.sqrt(2.0 / math.pi)


def _mlp_core(xs, y, g2, b2, ls1, w1, b1, w2, b2m, eps):
    # TODO(synk): the attention kernel already computes norm2 for token rows; reusing it
    # would drop this recompute + one (A, C) HBM read, but is only valid when
    # asy_index is a subset of index_token — kept general here.
    mu = jnp.mean(xs, axis=-1, keepdims=True)
    var = jnp.mean((xs - mu) ** 2, axis=-1, keepdims=True)
    shortcut = (xs - mu) * jax.lax.rsqrt(var + eps) * g2 + b2
    xa = shortcut + ls1 * y
    h = jnp.dot(xa.astype(jnp.bfloat16), w1, preferred_element_type=jnp.float32) + b1
    # GELU (tanh approximation), f32 EUP math
    h = 0.5 * h * (1.0 + jnp.tanh(_GELU_K * (h + 0.044715 * h * h * h)))
    xm = jnp.dot(h.astype(jnp.bfloat16), w2, preferred_element_type=jnp.float32) + b2m
    return xa, xm


def _mlp_kernel_split(xs_ref, y_ref, g2_ref, b2_ref, ls1_ref,
                      w1_ref, b1_ref, w2_ref, b2m_ref, xa_ref, xm_ref, *, eps):
    xa, xm = _mlp_core(xs_ref[...].astype(jnp.float32), y_ref[...].astype(jnp.float32),
                       g2_ref[...], b2_ref[...], ls1_ref[...],
                       w1_ref[...], b1_ref[...], w2_ref[...], b2m_ref[...], eps)
    xa_ref[...] = xa.astype(xa_ref.dtype)
    xm_ref[...] = xm.astype(xm_ref.dtype)


def _mlp_kernel_fused(xs_ref, y_ref, g2_ref, b2_ref, ls1_ref, ls2_ref,
                      w1_ref, b1_ref, w2_ref, b2m_ref, xo_ref, *, eps):
    xa, xm = _mlp_core(xs_ref[...].astype(jnp.float32), y_ref[...].astype(jnp.float32),
                       g2_ref[...], b2_ref[...], ls1_ref[...],
                       w1_ref[...], b1_ref[...], w2_ref[...], b2m_ref[...], eps)
    xo_ref[...] = (xa + ls2_ref[...] * xm).astype(xo_ref.dtype)   # ls2 residual fused in


def mlp_residual_pallas(xx_asy, y, g2, b2, ls1, W1, b1, W2, b2m, *, ls2=None, eps=1e-5):
    A, C = xx_asy.shape
    Hd = W1.shape[1]
    BR, Ap = _row_tiling(A)
    if Ap != A:
        xx_asy = jnp.pad(xx_asy, ((0, Ap - A), (0, 0)))
        y = jnp.pad(y, ((0, Ap - A), (0, 0)))
    rowspec = pl.BlockSpec((BR, C), lambda i: (i, 0))
    cvec = lambda n: pl.BlockSpec((1, n), lambda i: (0, 0))
    weight_specs = [pl.BlockSpec((C, Hd), lambda i: (0, 0)), cvec(Hd),
                    pl.BlockSpec((Hd, C), lambda i: (0, 0)), cvec(C)]
    fuse = ls2 is not None
    if fuse:
        kernel = partial(_mlp_kernel_fused, eps=eps)
        out_shape = jax.ShapeDtypeStruct((Ap, C), xx_asy.dtype)
        out_specs = rowspec
        in_specs = [rowspec, rowspec, cvec(C), cvec(C), cvec(C), cvec(C)] + weight_specs
        args = (xx_asy, y, g2, b2, ls1, ls2, W1, b1, W2, b2m)
    else:
        kernel = partial(_mlp_kernel_split, eps=eps)
        out_shape = (jax.ShapeDtypeStruct((Ap, C), xx_asy.dtype),
                     jax.ShapeDtypeStruct((Ap, C), xx_asy.dtype))
        out_specs = (rowspec, rowspec)
        in_specs = [rowspec, rowspec, cvec(C), cvec(C), cvec(C)] + weight_specs
        args = (xx_asy, y, g2, b2, ls1, W1, b1, W2, b2m)
    res = pl.pallas_call(
        kernel,
        out_shape=out_shape,
        grid=(Ap // BR,),
        in_specs=in_specs,
        out_specs=out_specs,
        compiler_params=pltpu.CompilerParams(dimension_semantics=("parallel",),
                                             vmem_limit_bytes=_VMEM_LIMIT),
    )(*args)
    if fuse:
        return res[:A] if Ap != A else res
    xa, xm = res
    return (xa[:A], xm[:A]) if Ap != A else (xa, xm)


# ----------------------------------------------------------------------------- forward (glue)

def ms_wsa_forward(x, index_window, index_token, padding_index, asy_index,
                   M, B, enable_CB, params, dim_head=32, eps=1e-5):
    restore_shape = x.shape
    N, C = x.shape[0], x.shape[-1]
    H = C // dim_head
    Dh = dim_head
    scale = dim_head ** (-0.5)

    x = x.reshape(N, -1, C)
    L = x.shape[1]

    # norm1 over all tokens (row-tiled Pallas LayerNorm)
    X = layernorm_pallas(x.reshape(-1, C), params['ln1_g'], params['ln1_b'],
                         eps=eps).reshape(N, L, C)

    if index_token.shape[0] == 0:                           # static early-out
        return X.reshape(restore_shape)

    # gather selected windows ("XX" = pre-norm2 copy)
    # TODO(synk): index_window/index_token/asy_index/padding_index gather-scatter and the
    # enable_CB cross-batch mean stay in XLA glue; a scalar-prefetch in-kernel DMA gather
    # (PrefetchScalarGridSpec + pl.ANY HBM refs) would remove these extra HBM passes.
    # TODO(synk): inter-kernel activations could be kept bf16 in HBM to halve glue traffic
    # (kept f32 here to stay numerically close to the f32 PyTorch reference).
    XX = X[index_window].reshape(-1, C)                     # (M*L, C)
    T = index_token.shape[0] // M

    # per-token flags (tiny integer bookkeeping)
    is_asy_full = jnp.zeros((M * L,), jnp.float32).at[asy_index].set(1.0)
    is_pad_full = jnp.zeros((M * L,), jnp.float32).at[padding_index].set(1.0)
    is_asy = is_asy_full[index_token].reshape(M, T, 1)
    key_pad = is_pad_full[index_token].reshape(M, 1, T)
    x_tok = XX[index_token].reshape(M, T, C)                # (M, T, C) pre-norm2 token rows

    # --- weight prep: head-major regrouping (matches view(...,H,3*Dh).chunk(3, dim=3)),
    #     fused [Q|K|V] columns, softmax scale folded into Q, bf16 MXU operands.
    Wt = params['w_qkv'].T.reshape(C, H, 3 * Dh)
    Wq = Wt[:, :, 0:Dh].reshape(C, C) * scale
    Wk = Wt[:, :, Dh:2 * Dh].reshape(C, C)
    Wv = Wt[:, :, 2 * Dh:3 * Dh].reshape(C, C)
    Wqkv = jnp.concatenate([Wq, Wk, Wv], axis=1).astype(jnp.bfloat16)       # (C, 3C)
    bt = params['b_qkv'].reshape(H, 3 * Dh)
    bq = bt[:, 0:Dh].reshape(C) * scale
    bk = bt[:, Dh:2 * Dh].reshape(C)
    bv = bt[:, 2 * Dh:3 * Dh].reshape(C)
    bqkv = jnp.concatenate([bq, bk, bv]).reshape(1, 3 * C).astype(jnp.float32)
    Wp = params['w_proj'].T.astype(jnp.bfloat16)                            # (C, C)
    bp = params['b_proj'].reshape(1, C).astype(jnp.float32)
    g2 = params['ln2_g'].reshape(1, C).astype(jnp.float32)
    b2 = params['ln2_b'].reshape(1, C).astype(jnp.float32)

    # --- window-block size: keep per-step f32 footprint within the VMEM budget.
    per_window_bytes = T * C * 4 * 6 + H * T * T * 4 * 2
    BM = _choose_window_block(M, per_window_bytes)

    # --- fused kernel: conditional norm2 + QKV + masked attention + proj, tiled over windows
    attn_out = wsa_attention_pallas(x_tok, is_asy, key_pad, g2, b2, Wqkv, bqkv, Wp, bp,
                                    M=M, T=T, H=H, Dh=Dh, BM=BM, eps=eps)

    XX_upd = XX.at[index_token].set(attn_out.reshape(-1, C))   # scatter attention output
    y_asy = XX_upd[asy_index]                                  # rows fed to the ls1 residual
    xx_asy = XX[asy_index]                                     # pre-norm2 rows (shortcut)

    ls1 = params['ls1'].reshape(1, C).astype(jnp.float32)
    ls2 = params['ls2'].reshape(1, C).astype(jnp.float32)
    W1 = params['w1'].T.astype(jnp.bfloat16)
    b1 = params['b1'].reshape(1, -1).astype(jnp.float32)
    W2 = params['w2'].T.astype(jnp.bfloat16)
    b2m = params['b2'].reshape(1, C).astype(jnp.float32)

    if enable_CB:
        # --- fused kernel: norm2 shortcut + ls1 residual + MLP (xa, xm separately:
        #     the cross-batch mixing needs xm before the ls2 residual)
        xa, xm = mlp_residual_pallas(xx_asy, y_asy, g2, b2, ls1, W1, b1, W2, b2m, eps=eps)
        temp_XX = jnp.zeros_like(XX_upd).at[asy_index].set(xm)
        temp_X = jnp.zeros((N, L, C), X.dtype).at[index_window].set(temp_XX.reshape(M, L, C))
        temp_X = temp_X.reshape(B, -1, C)
        temp_X = 0.5 * temp_X + 0.5 * jnp.mean(temp_X, axis=1, keepdims=True)
        temp_X = temp_X.reshape(N, L, C)
        xm = temp_X[index_window].reshape(-1, C)[asy_index]
        xo = xa + params['ls2'][None, :] * xm                  # drop2 == Identity
    else:
        # --- fused kernel with ls2 residual folded in: one (A, C) output stream
        xo = mlp_residual_pallas(xx_asy, y_asy, g2, b2, ls1, W1, b1, W2, b2m,
                                 ls2=ls2, eps=eps)

    XX_fin = XX_upd.at[asy_index].set(xo)
    XX_fin = XX_fin.at[padding_index].set(XX[padding_index])   # restore padding rows
    X_fin = X.at[index_window].set(XX_fin.reshape(M, L, C))
    return X_fin.reshape(restore_shape)


# ----------------------------------------------------------------------------- params

def init_params(key, C, expand=4, ls_init=0.1):
    ks = jax.random.split(key, 12)
    s = 0.02
    f32 = jnp.float32
    return {
        'ln1_g': (1.0 + 0.05 * jax.random.normal(ks[0], (C,))).astype(f32),
        'ln1_b': (0.05 * jax.random.normal(ks[1], (C,))).astype(f32),
        'ln2_g': (1.0 + 0.05 * jax.random.normal(ks[2], (C,))).astype(f32),
        'ln2_b': (0.05 * jax.random.normal(ks[3], (C,))).astype(f32),
        'w_qkv': (s * jax.random.normal(ks[4], (3 * C, C))).astype(f32),
        'b_qkv': (s * jax.random.normal(ks[5], (3 * C,))).astype(f32),
        'w_proj': (s * jax.random.normal(ks[6], (C, C))).astype(f32),
        'b_proj': (s * jax.random.normal(ks[7], (C,))).astype(f32),
        'w1': (s * jax.random.normal(ks[8], (expand * C, C))).astype(f32),
        'b1': (s * jax.random.normal(ks[9], (expand * C,))).astype(f32),
        'w2': (s * jax.random.normal(ks[10], (C, expand * C))).astype(f32),
        'b2': (s * jax.random.normal(ks[11], (C,))).astype(f32),
        'ls1': jnp.full((C,), ls_init, f32),
        'ls2': jnp.full((C,), ls_init, f32),
    }


# ----------------------------------------------------------------------------- main

if __name__ == "__main__":
    key = jax.random.PRNGKey(0)
    # NOTE: demo shapes are tiny (C=64 < 128 lanes); real deployments should use C, 3C, 4C
    # as multiples of 128 for lane-dense MXU/VPU operands.
    N, Hs, Ws, C = 10, 4, 4, 64         # 10 windows, 4x4 tokens each, dim=64
    L = Hs * Ws
    dim_head = 32                        # -> num_heads = 2
    B = 2                                # batch (for enable_CB mean)
    M = 8                                # selected windows -> attention grid of 2 blocks
    T = 8                                # tokens kept per window (6 real + 2 padding)

    kx, kp = jax.random.split(key)
    x = jax.random.normal(kx, (N, Hs, Ws, C), jnp.float32)

    index_window = jnp.array([0, 1, 2, 4, 5, 6, 8, 9], dtype=jnp.int32)               # (M,)
    base = jnp.arange(M, dtype=jnp.int32)[:, None] * L
    index_token = (base + jnp.arange(T, dtype=jnp.int32)[None, :]).reshape(-1)        # (M*T,)
    asy_index = (base + jnp.arange(6, dtype=jnp.int32)[None, :]).reshape(-1)          # (M*6,)
    padding_index = (base + jnp.arange(6, 8, dtype=jnp.int32)[None, :]).reshape(-1)   # (M*2,)

    params = init_params(kp, C, expand=4, ls_init=0.1)

    out_cb = ms_wsa_forward(x, index_window, index_token, padding_index, asy_index,
                            M=M, B=B, enable_CB=True, params=params, dim_head=dim_head)
    out_ncb = ms_wsa_forward(x, index_window, index_token, padding_index, asy_index,
                             M=M, B=B, enable_CB=False, params=params, dim_head=dim_head)
    out_cb, out_ncb = jax.block_until_ready((out_cb, out_ncb))
    assert out_cb.shape == x.shape and out_cb.dtype == x.dtype
    assert out_ncb.shape == x.shape and out_ncb.dtype == x.dtype
    assert bool(jnp.isfinite(out_cb).all()) and bool(jnp.isfinite(out_ncb).all())
    print("KERNEL_OK")
</pallas_src>

<mosaic_0001>
module attributes {stable_mosaic.version = 11 : i64} {
  func.func @_ln_kernel(%arg0: i32, %arg1: memref<160x64xf32, #tpu.memory_space<vmem>>, %arg2: memref<1x64xf32, #tpu.memory_space<vmem>>, %arg3: memref<1x64xf32, #tpu.memory_space<vmem>>, %arg4: memref<160x64xf32, #tpu.memory_space<vmem>>) attributes {dimension_semantics = [#tpu.dimension_semantics<parallel>], iteration_bounds = array<i64: 1>, scalar_prefetch = 0 : i64, scratch_operands = 0 : i64, tpu.core_type = #tpu.core_type<tc>, window_params = [{transform_indices = @transform_0, window_bounds = array<i64: 160, 64>}, {pipeline_mode = #tpu.pipeline_mode<synchronous>, transform_indices = @transform_1, window_bounds = array<i64: 1, 64>}, {pipeline_mode = #tpu.pipeline_mode<synchronous>, transform_indices = @transform_2, window_bounds = array<i64: 1, 64>}, {transform_indices = @transform_3, window_bounds = array<i64: 160, 64>}]} {
    %c0 = arith.constant 0 : index
    %c0_0 = arith.constant 0 : index
    %0 = vector.load %arg1[%c0, %c0_0] : memref<160x64xf32, #tpu.memory_space<vmem>>, vector<160x64xf32>
    %cst = arith.constant dense<0.000000e+00> : vector<160xf32>
    %1 = vector.multi_reduction <add>, %0, %cst [1] : vector<160x64xf32> to vector<160xf32>
    %2 = vector.shape_cast %1 : vector<160xf32> to vector<160x1xf32>
    %cst_1 = arith.constant 6.400000e+01 : f32
    %3 = vector.broadcast %cst_1 : f32 to vector<160x1xf32>
    %4 = arith.divf %2, %3 : vector<160x1xf32>
    %5 = vector.broadcast %4 : vector<160x1xf32> to vector<160x64xf32>
    %6 = arith.subf %0, %5 : vector<160x64xf32>
    %7 = arith.mulf %6, %6 : vector<160x64xf32>
    %cst_2 = arith.constant dense<0.000000e+00> : vector<160xf32>
    %8 = vector.multi_reduction <add>, %7, %cst_2 [1] : vector<160x64xf32> to vector<160xf32>
    %9 = vector.shape_cast %8 : vector<160xf32> to vector<160x1xf32>
    %cst_3 = arith.constant 6.400000e+01 : f32
    %10 = vector.broadcast %cst_3 : f32 to vector<160x1xf32>
    %11 = arith.divf %9, %10 : vector<160x1xf32>
    %12 = vector.broadcast %4 : vector<160x1xf32> to vector<160x64xf32>
    %13 = arith.subf %0, %12 : vector<160x64xf32>
    %cst_4 = arith.constant 9.99999974E-6 : f32
    %14 = vector.broadcast %cst_4 : f32 to vector<160x1xf32>
    %15 = arith.addf %11, %14 : vector<160x1xf32>
    %16 = math.rsqrt %15 : vector<160x1xf32>
    %17 = vector.broadcast %16 : vector<160x1xf32> to vector<160x64xf32>
    %18 = arith.mulf %13, %17 : vector<160x64xf32>
    %c0_5 = arith.constant 0 : index
    %c0_6 = arith.constant 0 : index
    %19 = vector.load %arg2[%c0_5, %c0_6] : memref<1x64xf32, #tpu.memory_space<vmem>>, vector<1x64xf32>
    %20 = vector.broadcast %19 : vector<1x64xf32> to vector<160x64xf32>
    %21 = arith.mulf %18, %20 : vector<160x64xf32>
    %c0_7 = arith.constant 0 : index
    %c0_8 = arith.constant 0 : index
    %22 = vector.load %arg3[%c0_7, %c0_8] : memref<1x64xf32, #tpu.memory_space<vmem>>, vector<1x64xf32>
    %23 = vector.broadcast %22 : vector<1x64xf32> to vector<160x64xf32>
    %24 = arith.addf %21, %23 : vector<160x64xf32>
    %c0_9 = arith.constant 0 : index
    %c0_10 = arith.constant 0 : index
    %25 = vector.load %arg4[%c0_9, %c0_10] : memref<160x64xf32, #tpu.memory_space<vmem>>, vector<160x64xf32>
    tpu.vector_store %arg4[%c0_9, %c0_10], %24 {strides = array<i32>} : memref<160x64xf32, #tpu.memory_space<vmem>>, vector<160x64xf32>,
    return
  }
  func.func @transform_0(%arg0: i32) -> (i32, i32) {
    %c0_i32 = arith.constant 0 : i32
    %c0_i32_0 = arith.constant 0 : i32
    return %arg0, %c0_i32 : i32, i32
  }
  func.func @transform_1(%arg0: i32) -> (i32, i32) {
    %c0_i32 = arith.constant 0 : i32
    %c0_i32_0 = arith.constant 0 : i32
    %c0_i32_1 = arith.constant 0 : i32
    return %c0_i32, %c0_i32_0 : i32, i32
  }
  func.func @transform_2(%arg0: i32) -> (i32, i32) {
    %c0_i32 = arith.constant 0 : i32
    %c0_i32_0 = arith.constant 0 : i32
    %c0_i32_1 = arith.constant 0 : i32
    return %c0_i32, %c0_i32_0 : i32, i32
  }
  func.func @transform_3(%arg0: i32) -> (i32, i32) {
    %c0_i32 = arith.constant 0 : i32
    %c0_i32_0 = arith.constant 0 : i32
    return %arg0, %c0_i32 : i32, i32
  }
}

</mosaic_0001>

<bundles_post_ra>
// kernel: tpu_custom_call.1
= control target key start
LH: loop header
LB: loop body
LE: loop exit
PB: predicated region body
PF: predicated region fallthrough
CT: control target
= control target key end

     0   :  { %vm34_vm0 = vcmask 523264   ;;  %s846_s0 = inlined_call_operand.vmem [shape: f32[160,64], index: 0, kind: input, shape index: {}]   ;;  %s847_s1 = inlined_call_operand.vmem [shape: f32[1,64], index: 1, kind: input, shape index: {}]   ;;  %s848_s2 = inlined_call_operand.vmem [shape: f32[1,64], index: 2, kind: input, shape index: {}]   ;;  %s849_s3 = inlined_call_operand.vmem [shape: f32[160,64], index: 3, kind: output, shape index: {}]  }
   0x1   :  { %v439_v0 = vld [vmem:[%s846_s0] sm:$0xff]  ;;  %v444_v1 = vld [vmem:[%s846_s0 + $0x10] sm:$0xff]  ;;  %v449_v2 = vld [vmem:[%s846_s0 + $0x8] sm:$0xff] }
   0x2   :  { %v35_v3 = vsel %vm34_vm0, %v439_v0, 0.0  ;;  %v41_v4 = vsel %vm34_vm0, %v444_v1, 0.0  ;;  %v458_v5 = vld [vmem:[%s846_s0 + $0x18] sm:$0xff]  ;;  %v38_v6 = vsel %vm34_vm0, %v449_v2, 0.0  ;;  %v467_v8 = vld [vmem:[%s846_s0 + $0x20] sm:$0xff]  ;;  %v472_v9 = vld [vmem:[%s846_s0 + $0x28] sm:$0xff] }
   0x3   :  { %36 = vadd.xlane.f32.xlu0 %v35_v3  ;;  %42 = vadd.xlane.f32.xlu1 %v41_v4  ;;  %v44_v7 = vsel %vm34_vm0, %v458_v5, 0.0  ;;  %v47_v10 = vsel %vm34_vm0, %v467_v8, 0.0  ;;  %v50_v11 = vsel %vm34_vm0, %v472_v9, 0.0  ;;  %v481_v12 = vld [vmem:[%s846_s0 + $0x30] sm:$0xff]  ;;  %v486_v13 = vld [vmem:[%s846_s0 + $0x38] sm:$0xff]  ;;  %v495_v16 = vld [vmem:[%s846_s0 + $0x40] sm:$0xff] }
   0x4   :  { %v53_v14 = vsel %vm34_vm0, %v481_v12, 0.0  ;;  %v56_v15 = vsel %vm34_vm0, %v486_v13, 0.0  ;;  %v500_v17 = vld [vmem:[%s846_s0 + $0x48] sm:$0xff]  ;;  %v59_v18 = vsel %vm34_vm0, %v495_v16, 0.0  ;;  %v509_v20 = vld [vmem:[%s846_s0 + $0x50] sm:$0xff]  ;;  %v514_v21 = vld [vmem:[%s846_s0 + $0x58] sm:$0xff] }
   0x5   :  { %v62_v19 = vsel %vm34_vm0, %v500_v17, 0.0  ;;  %v65_v22 = vsel %vm34_vm0, %v509_v20, 0.0  ;;  %v68_v23 = vsel %vm34_vm0, %v514_v21, 0.0  ;;  %v523_v24 = vld [vmem:[%s846_s0 + $0x60] sm:$0xff]  ;;  %v528_v25 = vld [vmem:[%s846_s0 + $0x68] sm:$0xff]  ;;  %v537_v28 = vld [vmem:[%s846_s0 + $0x70] sm:$0xff] }
   0x6   :  { %v71_v26 = vsel %vm34_vm0, %v523_v24, 0.0  ;;  %v74_v27 = vsel %vm34_vm0, %v528_v25, 0.0  ;;  %v542_v29 = vld [vmem:[%s846_s0 + $0x78] sm:$0xff]  ;;  %v77_v30 = vsel %vm34_vm0, %v537_v28, 0.0  ;;  %v551_v32 = vld [vmem:[%s846_s0 + $0x80] sm:$0xff]  ;;  %v556_v33 = vld [vmem:[%s846_s0 + $0x88] sm:$0xff] }
   0x7   :  { %39 = vadd.xlane.f32.xlu0 %v38_v6  ;;  %45 = vadd.xlane.f32.xlu1 %v44_v7  ;;  %v80_v31 = vsel %vm34_vm0, %v542_v29, 0.0  ;;  %v83_v34 = vsel %vm34_vm0, %v551_v32, 0.0  ;;  %v86_v35 = vsel %vm34_vm0, %v556_v33, 0.0  ;;  %v565_v36 = vld [vmem:[%s846_s0 + $0x90] sm:$0xff]  ;;  %v570_v37 = vld [vmem:[%s846_s0 + $0x98] sm:$0xff] }
   0x8   :  { %v89_v38 = vsel %vm34_vm0, %v565_v36, 0.0  ;;  %v92_v39 = vsel %vm34_vm0, %v570_v37, 0.0 }
   0xb   :  { %48 = vadd.xlane.f32.xlu0 %v47_v10  ;;  %51 = vadd.xlane.f32.xlu1 %v50_v11 }
   0xf   :  { %54 = vadd.xlane.f32.xlu0 %v53_v14  ;;  %57 = vadd.xlane.f32.xlu1 %v56_v15 }
  0x13   :  { %60 = vadd.xlane.f32.xlu0 %v59_v18  ;;  %63 = vadd.xlane.f32.xlu1 %v62_v19 }
  0x17   :  { %66 = vadd.xlane.f32.xlu0 %v65_v22  ;;  %69 = vadd.xlane.f32.xlu1 %v68_v23 }
  0x1b   :  { %72 = vadd.xlane.f32.xlu0 %v71_v26  ;;  %75 = vadd.xlane.f32.xlu1 %v74_v27 }
  0x1f   :  { %78 = vadd.xlane.f32.xlu0 %v77_v30  ;;  %81 = vadd.xlane.f32.xlu1 %v80_v31 }
  0x23   :  { %84 = vadd.xlane.f32.xlu0 %v83_v34  ;;  %87 = vadd.xlane.f32.xlu1 %v86_v35 }
  0x27   :  { %90 = vadd.xlane.f32.xlu0 %v89_v38  ;;  %93 = vadd.xlane.f32.xlu1 %v92_v39 }
  0x8c   :  { %v37_v40 = vpop.xlane.xlu0 %36  ;;  %v43_v41 = vpop.xlane.xlu1 %42 }
  0x8d   :  { %v96_v42 = vmul.f32 0.015625, %v37_v40  ;;  %v98_v43 = vmul.f32 0.015625, %v43_v41 }
  0x8f   :  { %v577_v44 = vsub.f32 %v439_v0, %v96_v42  ;;  %v580_v45 = vsub.f32 %v444_v1, %v98_v43 }
  0x90   :  { %v40_v46 = vpop.xlane.xlu0 %39  ;;  %v46_v47 = vpop.xlane.xlu1 %45 }
  0x91   :  { %v97_v48 = vmul.f32 0.015625, %v40_v46  ;;  %v99_v49 = vmul.f32 0.015625, %v46_v47  ;;  %v136_v50 = vmul.f32 %v577_v44, %v577_v44  ;;  %v138_v51 = vmul.f32 %v580_v45, %v580_v45 }
  0x93   :  { %v587_v52 = vsub.f32 %v449_v2, %v97_v48  ;;  %v590_v53 = vsub.f32 %v458_v5, %v99_v49  ;;  %v156_v54 = vsel %vm34_vm0, %v136_v50, 0.0  ;;  %v162_v57 = vsel %vm34_vm0, %v138_v51, 0.0 }
  0x94   :  { %157 = vadd.xlane.f32.xlu0 %v156_v54  ;;  %v49_v55 = vpop.xlane.xlu0 %48  ;;  %v52_v56 = vpop.xlane.xlu1 %51 }
  0x95   :  { %v100_v58 = vmul.f32 0.015625, %v49_v55  ;;  %v101_v59 = vmul.f32 0.015625, %v52_v56  ;;  %v137_v60 = vmul.f32 %v587_v52, %v587_v52  ;;  %v139_v61 = vmul.f32 %v590_v53, %v590_v53 }
  0x97   :  { %v599_v62 = vsub.f32 %v467_v8, %v100_v58  ;;  %v602_v63 = vsub.f32 %v472_v9, %v101_v59  ;;  %v159_v0 = vsel %vm34_vm0, %v137_v60, 0.0  ;;  %v165_v3 = vsel %vm34_vm0, %v139_v61, 0.0 }
  0x98   :  { %163 = vadd.xlane.f32.xlu0 %v162_v57  ;;  %160 = vadd.xlane.f32.xlu1 %v159_v0  ;;  %v55_v1 = vpop.xlane.xlu0 %54  ;;  %v58_v2 = vpop.xlane.xlu1 %57 }
  0x99   :  { %v102_v4 = vmul.f32 0.015625, %v55_v1  ;;  %v103_v5 = vmul.f32 0.015625, %v58_v2  ;;  %v140_v6 = vmul.f32 %v599_v62, %v599_v62  ;;  %v141_v7 = vmul.f32 %v602_v63, %v602_v63 }
  0x9b   :  { %v611_v8 = vsub.f32 %v481_v12, %v102_v4  ;;  %v614_v9 = vsub.f32 %v486_v13, %v103_v5  ;;  %v168_v10 = vsel %vm34_vm0, %v140_v6, 0.0  ;;  %v171_v15 = vsel %vm34_vm0, %v141_v7, 0.0 }
  0x9c   :  { %166 = vadd.xlane.f32.xlu1 %v165_v3  ;;  %169 = vadd.xlane.f32.xlu0 %v168_v10  ;;  %v61_v11 = vpop.xlane.xlu0 %60  ;;  %v64_v14 = vpop.xlane.xlu1 %63 }
  0x9d   :  { %v104_v18 = vmul.f32 0.015625, %v61_v11  ;;  %v105_v19 = vmul.f32 0.015625, %v64_v14  ;;  %v142_v22 = vmul.f32 %v611_v8, %v611_v8  ;;  %v143_v12 = vmul.f32 %v614_v9, %v614_v9 }
  0x9f   :  { %v623_v23 = vsub.f32 %v495_v16, %v104_v18  ;;  %v626_v13 = vsub.f32 %v500_v17, %v105_v19  ;;  %v174_v26 = vsel %vm34_vm0, %v142_v22, 0.0  ;;  %v177_v31 = vsel %vm34_vm0, %v143_v12, 0.0 }
  0xa0   :  { %172 = vadd.xlane.f32.xlu1 %v171_v15  ;;  %175 = vadd.xlane.f32.xlu0 %v174_v26  ;;  %v67_v27 = vpop.xlane.xlu0 %66  ;;  %v70_v30 = vpop.xlane.xlu1 %69 }
  0xa1   :  { %v106_v34 = vmul.f32 0.015625, %v67_v27  ;;  %v107_v35 = vmul.f32 0.015625, %v70_v30  ;;  %v144_v38 = vmul.f32 %v623_v23, %v623_v23  ;;  %v145_v16 = vmul.f32 %v626_v13, %v626_v13 }
  0xa3   :  { %v635_v39 = vsub.f32 %v509_v20, %v106_v34  ;;  %v638_v17 = vsub.f32 %v514_v21, %v107_v35  ;;  %v180_v40 = vsel %vm34_vm0, %v144_v38, 0.0  ;;  %v183_v43 = vsel %vm34_vm0, %v145_v16, 0.0 }
  0xa4   :  { %178 = vadd.xlane.f32.xlu1 %v177_v31  ;;  %181 = vadd.xlane.f32.xlu0 %v180_v40  ;;  %v73_v41 = vpop.xlane.xlu0 %72  ;;  %v76_v42 = vpop.xlane.xlu1 %75 }
  0xa5   :  { %v108_v46 = vmul.f32 0.015625, %v73_v41  ;;  %v109_v47 = vmul.f32 0.015625, %v76_v42  ;;  %v146_v48 = vmul.f32 %v635_v39, %v635_v39  ;;  %v147_v20 = vmul.f32 %v638_v17, %v638_v17 }
  0xa7   :  { %v647_v49 = vsub.f32 %v523_v24, %v108_v46  ;;  %v650_v21 = vsub.f32 %v528_v25, %v109_v47  ;;  %v186_v50 = vsel %vm34_vm0, %v146_v48, 0.0  ;;  %v189_v55 = vsel %vm34_vm0, %v147_v20, 0.0 }
  0xa8   :  { %184 = vadd.xlane.f32.xlu1 %v183_v43  ;;  %187 = vadd.xlane.f32.xlu0 %v186_v50  ;;  %v79_v51 = vpop.xlane.xlu0 %78  ;;  %v82_v54 = vpop.xlane.xlu1 %81 }
  0xa9   :  { %v110_v56 = vmul.f32 0.015625, %v79_v51  ;;  %v111_v57 = vmul.f32 0.015625, %v82_v54  ;;  %v148_v58 = vmul.f32 %v647_v49, %v647_v49  ;;  %v149_v24 = vmul.f32 %v650_v21, %v650_v21 }
  0xab   :  { %v659_v59 = vsub.f32 %v537_v28, %v110_v56  ;;  %v662_v25 = vsub.f32 %v542_v29, %v111_v57  ;;  %v192_v60 = vsel %vm34_vm0, %v148_v58, 0.0  ;;  %v195_v1 = vsel %vm34_vm0, %v149_v24, 0.0 }
  0xac   :  { %190 = vadd.xlane.f32.xlu1 %v189_v55  ;;  %193 = vadd.xlane.f32.xlu0 %v192_v60  ;;  %v85_v61 = vpop.xlane.xlu0 %84  ;;  %v88_v0 = vpop.xlane.xlu1 %87 }
  0xad   :  { %v112_v2 = vmul.f32 0.015625, %v85_v61  ;;  %v113_v3 = vmul.f32 0.015625, %v88_v0  ;;  %v150_v4 = vmul.f32 %v659_v59, %v659_v59  ;;  %v151_v28 = vmul.f32 %v662_v25, %v662_v25 }
  0xaf   :  { %v671_v5 = vsub.f32 %v551_v32, %v112_v2  ;;  %v674_v29 = vsub.f32 %v556_v33, %v113_v3  ;;  %v198_v6 = vsel %vm34_vm0, %v150_v4, 0.0  ;;  %v201_v11 = vsel %vm34_vm0, %v151_v28, 0.0  ;;  %v699_v2 = vld [vmem:[%s847_s1] ss:$0 sm:$0xff] }
  0xb0   :  { %196 = vadd.xlane.f32.xlu1 %v195_v1  ;;  %199 = vadd.xlane.f32.xlu0 %v198_v6  ;;  %v91_v7 = vpop.xlane.xlu0 %90  ;;  %v94_v10 = vpop.xlane.xlu1 %93  ;;  %v705_v6 = vld [vmem:[%s848_s2] ss:$0 sm:$0xff] }
  0xb1   :  { %v114_v14 = vmul.f32 0.015625, %v91_v7  ;;  %v115_v15 = vmul.f32 0.015625, %v94_v10  ;;  %v152_v18 = vmul.f32 %v671_v5, %v671_v5  ;;  %v153_v32 = vmul.f32 %v674_v29, %v674_v29 }
  0xb3   :  { %v683_v19 = vsub.f32 %v565_v36, %v114_v14  ;;  %v686_v33 = vsub.f32 %v570_v37, %v115_v15  ;;  %v204_v22 = vsel %vm34_vm0, %v152_v18, 0.0  ;;  %v207_v12 = vsel %vm34_vm0, %v153_v32, 0.0 }
  0xb4   :  { %202 = vadd.xlane.f32.xlu1 %v201_v11  ;;  %205 = vadd.xlane.f32.xlu0 %v204_v22 }
  0xb5   :  { %v154_v26 = vmul.f32 %v683_v19, %v683_v19  ;;  %v155_v27 = vmul.f32 %v686_v33, %v686_v33 }
  0xb7   :  { %v210_v30 = vsel %vm34_vm0, %v154_v26, 0.0  ;;  %v213_v36 = vsel %vm34_vm0, %v155_v27, 0.0 }
  0xb8   :  { %208 = vadd.xlane.f32.xlu1 %v207_v12  ;;  %211 = vadd.xlane.f32.xlu0 %v210_v30 }
  0xbc   :  { %214 = vadd.xlane.f32.xlu1 %v213_v36 }
 0x11d   :  { %v158_v37 = vpop.xlane.xlu0 %157 }
 0x11e   :  { %v216_v31 = vmul.f32 0.015625, %v158_v37 }
 0x120   :  { %v236_v34 = vadd.f32 1e-05, %v216_v31 }
 0x121   :  { %v161_v35 = vpop.xlane.xlu1 %160  ;;  %v164_v38 = vpop.xlane.xlu0 %163 }
 0x122   :  { %376 = vrsqrt.f32 %v236_v34  ;;  %v217_v16 = vmul.f32 0.015625, %v161_v35  ;;  %v218_v40 = vmul.f32 0.015625, %v164_v38 }
 0x124   :  { %v237_v41 = vadd.f32 1e-05, %v217_v16  ;;  %v238_v42 = vadd.f32 1e-05, %v218_v40 }
 0x125   :  { %v167_v43 = vpop.xlane.xlu1 %166  ;;  %v170_v46 = vpop.xlane.xlu0 %169 }
 0x126   :  { %378 = vrsqrt.f32 %v237_v41  ;;  %v219_v47 = vmul.f32 0.015625, %v167_v43  ;;  %v220_v48 = vmul.f32 0.015625, %v170_v46 }
 0x127   :  { %380 = vrsqrt.f32 %v238_v42 }
 0x128   :  { %v239_v20 = vadd.f32 1e-05, %v219_v47  ;;  %v240_v50 = vadd.f32 1e-05, %v220_v48 }
 0x129   :  { %v173_v51 = vpop.xlane.xlu1 %172  ;;  %v176_v54 = vpop.xlane.xlu0 %175 }
 0x12a   :  { %382 = vrsqrt.f32 %v239_v20  ;;  %v221_v55 = vmul.f32 0.015625, %v173_v51  ;;  %v222_v56 = vmul.f32 0.015625, %v176_v54 }
 0x12b   :  { %384 = vrsqrt.f32 %v240_v50 }
 0x12c   :  { %v241_v57 = vadd.f32 1e-05, %v221_v55  ;;  %v242_v58 = vadd.f32 1e-05, %v222_v56 }
 0x12d   :  { %v179_v24 = vpop.xlane.xlu1 %178  ;;  %v182_v60 = vpop.xlane.xlu0 %181 }
 0x12e   :  { %386 = vrsqrt.f32 %v241_v57  ;;  %v223_v61 = vmul.f32 0.015625, %v179_v24  ;;  %v224_v0 = vmul.f32 0.015625, %v182_v60 }
 0x12f   :  { %v377_v1 = vpop.eup %376  ;;  %388 = vrsqrt.f32 %v242_v58 }
 0x130   :  { %v276_v3 = vmul.f32 %v377_v1, %v577_v44  ;;  %v243_v4 = vadd.f32 1e-05, %v223_v61  ;;  %v244_v28 = vadd.f32 1e-05, %v224_v0 }
 0x131   :  { %v185_v7 = vpop.xlane.xlu1 %184  ;;  %v188_v10 = vpop.xlane.xlu0 %187 }
 0x132   :  { %v303_v11 = vmul.f32 %v699_v2, %v276_v3  ;;  %390 = vrsqrt.f32 %v243_v4  ;;  %v225_v14 = vmul.f32 0.015625, %v185_v7  ;;  %v226_v15 = vmul.f32 0.015625, %v188_v10 }
 0x133   :  { %v379_v18 = vpop.eup %378  ;;  %392 = vrsqrt.f32 %v244_v28 }
 0x134   :  { %v381_v32 = vpop.eup %380  ;;  %v330_v22 = vadd.f32 %v705_v6, %v303_v11  ;;  %v277_v44 = vmul.f32 %v379_v18, %v587_v52  ;;  %v245_v12 = vadd.f32 1e-05, %v225_v14  ;;  %v246_v26 = vadd.f32 1e-05, %v226_v15 }
 0x135   :  { %v278_v27 = vmul.f32 %v381_v32, %v580_v45  ;;  %v191_v30 = vpop.xlane.xlu1 %190  ;;  %v194_v36 = vpop.xlane.xlu0 %193 }
 0x136   :  { %350 = vst.msk [vmem:[%s849_s3] sm:$0xff] %vm34_vm0, %v330_v22  ;;  %v304_v37 = vmul.f32 %v699_v2, %v277_v44  ;;  %394 = vrsqrt.f32 %v245_v12  ;;  %v227_v31 = vmul.f32 0.015625, %v191_v30  ;;  %v228_v34 = vmul.f32 0.015625, %v194_v36 }
 0x137   :  { %v383_v35 = vpop.eup %382  ;;  %v305_v38 = vmul.f32 %v699_v2, %v278_v27  ;;  %396 = vrsqrt.f32 %v246_v26 }
 0x138   :  { %v385_v52 = vpop.eup %384  ;;  %v331_v16 = vadd.f32 %v705_v6, %v304_v37  ;;  %v279_v45 = vmul.f32 %v383_v35, %v590_v53  ;;  %v247_v40 = vadd.f32 1e-05, %v227_v31  ;;  %v248_v41 = vadd.f32 1e-05, %v228_v34 }
 0x139   :  { %v332_v42 = vadd.f32 %v705_v6, %v305_v38  ;;  %v280_v43 = vmul.f32 %v385_v52, %v599_v62  ;;  %v197_v46 = vpop.xlane.xlu1 %196  ;;  %v200_v47 = vpop.xlane.xlu0 %199 }
 0x13a   :  { %351 = vst.msk [vmem:[%s849_s3 + $0x8] sm:$0xff] %vm34_vm0, %v331_v16  ;;  %v306_v48 = vmul.f32 %v699_v2, %v279_v45  ;;  %398 = vrsqrt.f32 %v247_v40  ;;  %v229_v20 = vmul.f32 0.015625, %v197_v46  ;;  %v230_v50 = vmul.f32 0.015625, %v200_v47 }
 0x13b   :  { %v387_v51 = vpop.eup %386  ;;  %352 = vst.msk [vmem:[%s849_s3 + $0x10] sm:$0xff] %vm34_vm0, %v332_v42  ;;  %v307_v53 = vmul.f32 %v699_v2, %v280_v43  ;;  %400 = vrsqrt.f32 %v248_v41 }
 0x13c   :  { %v389_v62 = vpop.eup %388  ;;  %v333_v54 = vadd.f32 %v705_v6, %v306_v48  ;;  %v281_v55 = vmul.f32 %v387_v51, %v602_v63  ;;  %v249_v56 = vadd.f32 1e-05, %v229_v20  ;;  %v250_v57 = vadd.f32 1e-05, %v230_v50 }
 0x13d   :  { %v334_v58 = vadd.f32 %v705_v6, %v307_v53  ;;  %v282_v24 = vmul.f32 %v389_v62, %v611_v8  ;;  %v203_v60 = vpop.xlane.xlu1 %202  ;;  %v206_v61 = vpop.xlane.xlu0 %205 }
 0x13e   :  { %353 = vst.msk [vmem:[%s849_s3 + $0x18] sm:$0xff] %vm34_vm0, %v333_v54  ;;  %v308_v0 = vmul.f32 %v699_v2, %v281_v55  ;;  %402 = vrsqrt.f32 %v249_v56  ;;  %v231_v1 = vmul.f32 0.015625, %v203_v60  ;;  %v232_v3 = vmul.f32 0.015625, %v206_v61 }
 0x13f   :  { %v391_v4 = vpop.eup %390  ;;  %354 = vst.msk [vmem:[%s849_s3 + $0x20] sm:$0xff] %vm34_vm0, %v334_v58  ;;  %v309_v63 = vmul.f32 %v699_v2, %v282_v24  ;;  %404 = vrsqrt.f32 %v250_v57 }
 0x140   :  { %v393_v8 = vpop.eup %392  ;;  %v335_v28 = vadd.f32 %v705_v6, %v308_v0  ;;  %v283_v7 = vmul.f32 %v391_v4, %v614_v9  ;;  %v251_v10 = vadd.f32 1e-05, %v231_v1  ;;  %v252_v11 = vadd.f32 1e-05, %v232_v3 }
 0x141   :  { %v336_v14 = vadd.f32 %v705_v6, %v309_v63  ;;  %v284_v15 = vmul.f32 %v393_v8, %v623_v23  ;;  %v209_v18 = vpop.xlane.xlu1 %208  ;;  %v212_v32 = vpop.xlane.xlu0 %211 }
 0x142   :  { %355 = vst.msk [vmem:[%s849_s3 + $0x28] sm:$0xff] %vm34_vm0, %v335_v28  ;;  %v310_v22 = vmul.f32 %v699_v2, %v283_v7  ;;  %406 = vrsqrt.f32 %v251_v10  ;;  %v233_v44 = vmul.f32 0.015625, %v209_v18  ;;  %v234_v12 = vmul.f32 0.015625, %v212_v32 }
 0x143   :  { %v395_v26 = vpop.eup %394  ;;  %356 = vst.msk [vmem:[%s849_s3 + $0x30] sm:$0xff] %vm34_vm0, %v336_v14  ;;  %v311_v9 = vmul.f32 %v699_v2, %v284_v15  ;;  %408 = vrsqrt.f32 %v252_v11 }
 0x144   :  { %v397_v23 = vpop.eup %396  ;;  %v337_v27 = vadd.f32 %v705_v6, %v310_v22  ;;  %v285_v30 = vmul.f32 %v395_v26, %v626_v13  ;;  %v253_v36 = vadd.f32 1e-05, %v233_v44  ;;  %v254_v37 = vadd.f32 1e-05, %v234_v12 }
 0x145   :  { %v338_v31 = vadd.f32 %v705_v6, %v311_v9  ;;  %v286_v34 = vmul.f32 %v397_v23, %v635_v39  ;;  %v215_v35 = vpop.xlane.xlu1 %214 }
 0x146   :  { %357 = vst.msk [vmem:[%s849_s3 + $0x38] sm:$0xff] %vm34_vm0, %v337_v27  ;;  %v312_v38 = vmul.f32 %v699_v2, %v285_v30  ;;  %410 = vrsqrt.f32 %v253_v36  ;;  %v235_v52 = vmul.f32 0.015625, %v215_v35 }
 0x147   :  { %v399_v16 = vpop.eup %398  ;;  %358 = vst.msk [vmem:[%s849_s3 + $0x40] sm:$0xff] %vm34_vm0, %v338_v31  ;;  %v313_v13 = vmul.f32 %v699_v2, %v286_v34  ;;  %412 = vrsqrt.f32 %v254_v37 }
 0x148   :  { %v401_v39 = vpop.eup %400  ;;  %v339_v45 = vadd.f32 %v705_v6, %v312_v38  ;;  %v287_v40 = vmul.f32 %v399_v16, %v638_v17  ;;  %v255_v41 = vadd.f32 1e-05, %v235_v52 }
 0x149   :  { %v340_v42 = vadd.f32 %v705_v6, %v313_v13  ;;  %v288_v43 = vmul.f32 %v401_v39, %v647_v49 }
 0x14a   :  { %359 = vst.msk [vmem:[%s849_s3 + $0x48] sm:$0xff] %vm34_vm0, %v339_v45  ;;  %v314_v46 = vmul.f32 %v699_v2, %v287_v40  ;;  %414 = vrsqrt.f32 %v255_v41 }
 0x14b   :  { %v403_v47 = vpop.eup %402  ;;  %360 = vst.msk [vmem:[%s849_s3 + $0x50] sm:$0xff] %vm34_vm0, %v340_v42  ;;  %v315_v17 = vmul.f32 %v699_v2, %v288_v43 }
 0x14c   :  { %v405_v48 = vpop.eup %404  ;;  %v341_v20 = vadd.f32 %v705_v6, %v314_v46  ;;  %v289_v49 = vmul.f32 %v403_v47, %v650_v21 }
 0x14d   :  { %v342_v50 = vadd.f32 %v705_v6, %v315_v17  ;;  %v290_v51 = vmul.f32 %v405_v48, %v659_v59 }
 0x14e   :  { %361 = vst.msk [vmem:[%s849_s3 + $0x58] sm:$0xff] %vm34_vm0, %v341_v20  ;;  %v316_v53 = vmul.f32 %v699_v2, %v289_v49 }
 0x14f   :  { %v407_v62 = vpop.eup %406  ;;  %362 = vst.msk [vmem:[%s849_s3 + $0x60] sm:$0xff] %vm34_vm0, %v342_v50  ;;  %v317_v54 = vmul.f32 %v699_v2, %v290_v51 }
 0x150   :  { %v409_v21 = vpop.eup %408  ;;  %v343_v55 = vadd.f32 %v705_v6, %v316_v53  ;;  %v291_v59 = vmul.f32 %v407_v62, %v662_v25 }
 0x151   :  { %v344_v56 = vadd.f32 %v705_v6, %v317_v54  ;;  %v292_v57 = vmul.f32 %v409_v21, %v671_v5 }
 0x152   :  { %363 = vst.msk [vmem:[%s849_s3 + $0x68] sm:$0xff] %vm34_vm0, %v343_v55  ;;  %v318_v58 = vmul.f32 %v699_v2, %v291_v59 }
 0x153   :  { %v411_v24 = vpop.eup %410  ;;  %364 = vst.msk [vmem:[%s849_s3 + $0x70] sm:$0xff] %vm34_vm0, %v344_v56  ;;  %v319_v60 = vmul.f32 %v699_v2, %v292_v57 }
 0x154   :  { %v413_v25 = vpop.eup %412  ;;  %v345_v61 = vadd.f32 %v705_v6, %v318_v58  ;;  %v293_v5 = vmul.f32 %v411_v24, %v674_v29 }
 0x155   :  { %v346_v0 = vadd.f32 %v705_v6, %v319_v60  ;;  %v294_v1 = vmul.f32 %v413_v25, %v683_v19 }
 0x156   :  { %365 = vst.msk [vmem:[%s849_s3 + $0x78] sm:$0xff] %vm34_vm0, %v345_v61  ;;  %v320_v3 = vmul.f32 %v699_v2, %v293_v5 }
 0x157   :  { %v415_v4 = vpop.eup %414  ;;  %366 = vst.msk [vmem:[%s849_s3 + $0x80] sm:$0xff] %vm34_vm0, %v346_v0  ;;  %v321_v63 = vmul.f32 %v699_v2, %v294_v1 }
 0x158   :  { %v347_v29 = vadd.f32 %v705_v6, %v320_v3  ;;  %v295_v8 = vmul.f32 %v415_v4, %v686_v33 }
 0x159   :  { %v348_v19 = vadd.f32 %v705_v6, %v321_v63 }
 0x15a   :  { %367 = vst.msk [vmem:[%s849_s3 + $0x88] sm:$0xff] %vm34_vm0, %v347_v29  ;;  %v322_v28 = vmul.f32 %v699_v2, %v295_v8 }
 0x15b   :  { %368 = vst.msk [vmem:[%s849_s3 + $0x90] sm:$0xff] %vm34_vm0, %v348_v19 }
 0x15c   :  { %v349_v7 = vadd.f32 %v705_v6, %v322_v28 }
 0x15e   :  { %369 = vst.msk [vmem:[%s849_s3 + $0x98] sm:$0xff] %vm34_vm0, %v349_v7 }

</bundles_post_ra>
